<compile_context>
chip_gen: v7x
topology: tpu7x:2x2x1
jax: 0.10.0
libtpu: 0.0.40
codegen_flags: <defaults>
</compile_context>

<pallas_src>
import functools

import jax
import jax.numpy as jnp
from jax.experimental import pallas as pl
from jax.experimental.pallas import tpu as pltpu


def _round_up(x, m):
    return ((x + m - 1) // m) * m


def _resunet_kernel(num_layers, compute_dtype,
                    x_ref, w_in_ref, b_in_ref,
                    w1_ref, b1_ref, w2_ref, b2_ref,
                    w_out_ref, b_out_ref,
                    o_ref, h_ref):
    """One (batch_tile, layer) grid step.

    x_ref    : (TB, IN_P)            padded input tile
    w_in_ref : (IN_P, D_P)  b_in_ref : (1, D_P)
    w1_ref   : (D_P, D_P)   b1_ref   : (1, D_P)   (this layer's fc1, streamed)
    w2_ref   : (D_P, D_P)   b2_ref   : (1, D_P)   (this layer's fc2, streamed)
    w_out_ref: (D_P, IN_P)  b_out_ref: (1, IN_P)
    o_ref    : (TB, IN_P)            padded output tile
    h_ref    : (TB, D_P) f32 scratch carrying activations across the layer axis
    """
    l = pl.program_id(1)

    # input_proj only on the first layer step of this batch tile.
    @pl.when(l == 0)
    def _():
        x = x_ref[...].astype(compute_dtype)
        h_ref[...] = jnp.dot(x, w_in_ref[...],
                             preferred_element_type=jnp.float32) + b_in_ref[...]

    # ResidualBlock: fc2(relu(fc1(h)))  (no skip add, matching PyTorch forward).
    h = h_ref[...]
    h1 = jnp.dot(h.astype(compute_dtype), w1_ref[...],
                 preferred_element_type=jnp.float32) + b1_ref[...]
    h1 = jnp.maximum(h1, 0.0)                              # ReLU in f32
    h_ref[...] = jnp.dot(h1.astype(compute_dtype), w2_ref[...],
                         preferred_element_type=jnp.float32) + b2_ref[...]

    # output_proj + store only on the last layer step of this batch tile.
    @pl.when(l == num_layers - 1)
    def _():
        out = jnp.dot(h_ref[...].astype(compute_dtype), w_out_ref[...],
                      preferred_element_type=jnp.float32) + b_out_ref[...]
        o_ref[...] = out.astype(o_ref.dtype)


def resunet_forward(x, padded_params, *, num_layers, tile_b=None):
    """Pallas wrapper.  x: (B, input_dim) f32 (unpadded); params from pad_params()."""
    w_in, b_in, w1, b1, w2, b2, w_out, b_out = padded_params
    B, input_dim = x.shape
    in_pad, d_pad = w_in.shape
    L = w1.shape[0]
    assert L == num_layers and num_layers >= 1
    compute_dtype = w_in.dtype

    # Batch tiling: multiple of 8 sublanes; large tiles fill the MXU M dim.
    b_min = _round_up(max(B, 8), 8)
    if tile_b is None:
        tile_b = min(512, b_min)
    tile_b = _round_up(tile_b, 8)
    b_pad = _round_up(b_min, tile_b)
    n_btiles = b_pad // tile_b

    x_p = jnp.zeros((b_pad, in_pad), x.dtype).at[:B, :input_dim].set(x)

    kernel = functools.partial(_resunet_kernel, num_layers, compute_dtype)

    out_p = pl.pallas_call(
        kernel,
        out_shape=jax.ShapeDtypeStruct((b_pad, in_pad), x.dtype),
        grid_spec=pltpu.PrefetchScalarGridSpec(
            num_scalar_prefetch=0,
            grid=(n_btiles, num_layers),
            in_specs=[
                pl.BlockSpec((tile_b, in_pad), lambda b, l: (b, 0)),          # x tile
                pl.BlockSpec((in_pad, d_pad), lambda b, l: (0, 0)),           # w_in (resident)
                pl.BlockSpec((1, d_pad), lambda b, l: (0, 0)),                # b_in
                pl.BlockSpec((None, d_pad, d_pad), lambda b, l: (l, 0, 0)),   # w1[l]
                pl.BlockSpec((None, 1, d_pad), lambda b, l: (l, 0, 0)),       # b1[l]
                pl.BlockSpec((None, d_pad, d_pad), lambda b, l: (l, 0, 0)),   # w2[l]
                pl.BlockSpec((None, 1, d_pad), lambda b, l: (l, 0, 0)),       # b2[l]
                pl.BlockSpec((d_pad, in_pad), lambda b, l: (0, 0)),           # w_out (resident)
                pl.BlockSpec((1, in_pad), lambda b, l: (0, 0)),               # b_out
            ],
            out_specs=pl.BlockSpec((tile_b, in_pad), lambda b, l: (b, 0)),
            scratch_shapes=[pltpu.VMEM((tile_b, d_pad), jnp.float32)],
        ),
        compiler_params=pltpu.CompilerParams(
            dimension_semantics=("parallel", "arbitrary"),
            vmem_limit_bytes=32 * 1024 * 1024,
        ),
    )(x_p, w_in, b_in, w1, b1, w2, b2, w_out, b_out)

    return out_p[:B, :input_dim]


def init_params(key, input_dim, dmodel, num_layers):
    """Deterministic synthetic parameters (PyTorch-Linear-like uniform init),
    stored in (in, out) layout so the kernel computes x @ W + b.  Unpadded, f32."""
    ks = jax.random.split(key, 2 + 2 * num_layers)
    it = iter(ks)

    def linear(k, fan_in, fan_out):
        kw, kb = jax.random.split(k)
        bound = 1.0 / jnp.sqrt(fan_in)
        w = jax.random.uniform(kw, (fan_in, fan_out), jnp.float32, -bound, bound)
        b = jax.random.uniform(kb, (1, fan_out), jnp.float32, -bound, bound)
        return w, b

    w_in, b_in = linear(next(it), input_dim, dmodel)
    w1s, b1s, w2s, b2s = [], [], [], []
    for _ in range(num_layers):
        w1, b1 = linear(next(it), dmodel, dmodel)
        w2, b2 = linear(next(it), dmodel, dmodel)
        w1s.append(w1); b1s.append(b1)          # b is (1, dmodel) -> stack -> (L,1,dmodel)
        w2s.append(w2); b2s.append(b2)
    w_out, b_out = linear(next(it), dmodel, input_dim)

    return (w_in, b_in,
            jnp.stack(w1s), jnp.stack(b1s),
            jnp.stack(w2s), jnp.stack(b2s),
            w_out, b_out)


def pad_params(params, *, weight_dtype=jnp.float32, lane=128):
    """Zero-pad feature dims up to 128-lane multiples; cast weights to
    `weight_dtype` (bf16 recommended on v6e/v7x); biases stay f32."""
    w_in, b_in, w1, b1, w2, b2, w_out, b_out = params
    input_dim, dmodel = w_in.shape
    in_p = _round_up(input_dim, lane)
    d_p = _round_up(dmodel, lane)

    def pad2(a, r, c):
        return jnp.zeros((r, c), a.dtype).at[:a.shape[0], :a.shape[1]].set(a)

    def pad3(a, r, c):
        return jnp.zeros((a.shape[0], r, c), a.dtype).at[:, :a.shape[1], :a.shape[2]].set(a)

    return (pad2(w_in, in_p, d_p).astype(weight_dtype),
            pad2(b_in, 1, d_p).astype(jnp.float32),
            pad3(w1, d_p, d_p).astype(weight_dtype),
            pad3(b1, 1, d_p).astype(jnp.float32),
            pad3(w2, d_p, d_p).astype(weight_dtype),
            pad3(b2, 1, d_p).astype(jnp.float32),
            pad2(w_out, d_p, in_p).astype(weight_dtype),
            pad2(b_out, 1, in_p).astype(jnp.float32))


def resunet_reference(x, params, *, num_layers):
    """Pure-JAX reference mirroring the PyTorch forward (f32 math)."""
    w_in, b_in, w1, b1, w2, b2, w_out, b_out = [p.astype(jnp.float32) for p in params]
    h = x @ w_in + b_in
    for l in range(num_layers):
        h1 = jnp.maximum(h @ w1[l] + b1[l], 0.0)
        h = h1 @ w2[l] + b2[l]
    return h @ w_out + b_out


if __name__ == "__main__":
    INPUT_DIM = 16
    DMODEL = 32
    NUM_LAYERS = 3
    BATCH = 8

    key = jax.random.PRNGKey(0)
    kx, kp = jax.random.split(key)
    x = jax.random.normal(kx, (BATCH, INPUT_DIM), jnp.float32)
    params = init_params(kp, INPUT_DIM, DMODEL, NUM_LAYERS)

    # --- f32 weights: strict check against the pure-JAX reference -----------
    out_f32 = jax.block_until_ready(
        resunet_forward(x, pad_params(params, weight_dtype=jnp.float32),
                        num_layers=NUM_LAYERS))
    ref_f32 = resunet_reference(x, params, num_layers=NUM_LAYERS)
    assert out_f32.shape == (BATCH, INPUT_DIM)
    assert jnp.allclose(out_f32, ref_f32, atol=1e-4, rtol=1e-4), "f32 mismatch"

    # --- bf16 weights (recommended on v6e/v7x), f32 accumulation -------------
    out_bf16 = jax.block_until_ready(
        resunet_forward(x, pad_params(params, weight_dtype=jnp.bfloat16),
                        num_layers=NUM_LAYERS))
    ref_params_bf16 = tuple(
        p.astype(jnp.bfloat16).astype(jnp.float32) if i % 2 == 0 else p  # weights at even idx
        for i, p in enumerate(params))
    ref_bf16 = resunet_reference(x, ref_params_bf16, num_layers=NUM_LAYERS)
    assert jnp.allclose(out_bf16, ref_bf16, atol=3e-2, rtol=3e-2), "bf16 mismatch"

    print("KERNEL_OK")
</pallas_src>

<mosaic_0001>
module attributes {stable_mosaic.version = 11 : i64} {
  func.func @_resunet_kernel(%arg0: i32, %arg1: i32, %arg2: memref<8x128xf32, #tpu.memory_space<vmem>>, %arg3: memref<128x128xf32, #tpu.memory_space<vmem>>, %arg4: memref<1x128xf32, #tpu.memory_space<vmem>>, %arg5: memref<1x128x128xf32, #tpu.memory_space<vmem>>, %arg6: memref<1x1x128xf32, #tpu.memory_space<vmem>>, %arg7: memref<1x128x128xf32, #tpu.memory_space<vmem>>, %arg8: memref<1x1x128xf32, #tpu.memory_space<vmem>>, %arg9: memref<128x128xf32, #tpu.memory_space<vmem>>, %arg10: memref<1x128xf32, #tpu.memory_space<vmem>>, %arg11: memref<8x128xf32, #tpu.memory_space<vmem>>, %arg12: memref<8x128xf32, #tpu.memory_space<vmem>>) attributes {dimension_semantics = [#tpu.dimension_semantics<parallel>, #tpu.dimension_semantics<arbitrary>], iteration_bounds = array<i64: 1, 3>, scalar_prefetch = 0 : i64, scratch_operands = 1 : i64, tpu.core_type = #tpu.core_type<tc>, window_params = [{transform_indices = @transform_0, window_bounds = array<i64: 8, 128>}, {pipeline_mode = #tpu.pipeline_mode<synchronous>, transform_indices = @transform_1, window_bounds = array<i64: 128, 128>}, {pipeline_mode = #tpu.pipeline_mode<synchronous>, transform_indices = @transform_2, window_bounds = array<i64: 1, 128>}, {transform_indices = @transform_3, window_bounds = array<i64: 1, 128, 128>}, {transform_indices = @transform_4, window_bounds = array<i64: 1, 1, 128>}, {transform_indices = @transform_5, window_bounds = array<i64: 1, 128, 128>}, {transform_indices = @transform_6, window_bounds = array<i64: 1, 1, 128>}, {pipeline_mode = #tpu.pipeline_mode<synchronous>, transform_indices = @transform_7, window_bounds = array<i64: 128, 128>}, {pipeline_mode = #tpu.pipeline_mode<synchronous>, transform_indices = @transform_8, window_bounds = array<i64: 1, 128>}, {transform_indices = @transform_9, window_bounds = array<i64: 8, 128>}]} {
    %c0_i32 = arith.constant 0 : i32
    %0 = arith.cmpi eq, %arg1, %c0_i32 : i32
    %1 = arith.extui %0 : i1 to i32
    %c0_i32_0 = arith.constant 0 : i32
    %2 = arith.cmpi ne, %1, %c0_i32_0 : i32
    scf.if %2 {
      %c0_19 = arith.constant 0 : index
      %c0_20 = arith.constant 0 : index
      %24 = vector.load %arg2[%c0_19, %c0_20] : memref<8x128xf32, #tpu.memory_space<vmem>>, vector<8x128xf32>
      %c0_21 = arith.constant 0 : index
      %c0_22 = arith.constant 0 : index
      %25 = vector.load %arg3[%c0_21, %c0_22] : memref<128x128xf32, #tpu.memory_space<vmem>>, vector<128x128xf32>
      %cst_23 = arith.constant dense<0.000000e+00> : vector<8x128xf32>
      %26 = tpu.matmul %24, %25, %cst_23 {dimension_numbers = #tpu.dot_dimension_numbers<[1], [0], [0], [1], [0, 0, 1, 1], [], []>} : vector<8x128xf32>, vector<128x128xf32>, vector<8x128xf32> -> vector<8x128xf32>
      %c0_24 = arith.constant 0 : index
      %c0_25 = arith.constant 0 : index
      %27 = vector.load %arg4[%c0_24, %c0_25] : memref<1x128xf32, #tpu.memory_space<vmem>>, vector<1x128xf32>
      %28 = vector.broadcast %27 : vector<1x128xf32> to vector<8x128xf32>
      %29 = arith.addf %26, %28 : vector<8x128xf32>
      %c0_26 = arith.constant 0 : index
      %c0_27 = arith.constant 0 : index
      %30 = vector.load %arg12[%c0_26, %c0_27] : memref<8x128xf32, #tpu.memory_space<vmem>>, vector<8x128xf32>
      tpu.vector_store %arg12[%c0_26, %c0_27], %29 {strides = array<i32>} : memref<8x128xf32, #tpu.memory_space<vmem>>, vector<8x128xf32>,
    } else {
    }
    %c0 = arith.constant 0 : index
    %c0_1 = arith.constant 0 : index
    %3 = vector.load %arg12[%c0, %c0_1] : memref<8x128xf32, #tpu.memory_space<vmem>>, vector<8x128xf32>
    %c0_2 = arith.constant 0 : index
    %c0_3 = arith.constant 0 : index
    %c0_4 = arith.constant 0 : index
    %4 = vector.load %arg5[%c0_2, %c0_3, %c0_4] : memref<1x128x128xf32, #tpu.memory_space<vmem>>, vector<1x128x128xf32>
    %5 = vector.shape_cast %4 : vector<1x128x128xf32> to vector<128x128xf32>
    %cst = arith.constant dense<0.000000e+00> : vector<8x128xf32>
    %6 = tpu.matmul %3, %5, %cst {dimension_numbers = #tpu.dot_dimension_numbers<[1], [0], [0], [1], [0, 0, 1, 1], [], []>} : vector<8x128xf32>, vector<128x128xf32>, vector<8x128xf32> -> vector<8x128xf32>
    %c0_5 = arith.constant 0 : index
    %c0_6 = arith.constant 0 : index
    %c0_7 = arith.constant 0 : index
    %7 = vector.load %arg6[%c0_5, %c0_6, %c0_7] : memref<1x1x128xf32, #tpu.memory_space<vmem>>, vector<1x1x128xf32>
    %8 = vector.shape_cast %7 : vector<1x1x128xf32> to vector<1x128xf32>
    %9 = vector.broadcast %8 : vector<1x128xf32> to vector<8x128xf32>
    %10 = arith.addf %6, %9 : vector<8x128xf32>
    %cst_8 = arith.constant 0.000000e+00 : f32
    %11 = vector.broadcast %cst_8 : f32 to vector<8x128xf32>
    %12 = arith.maximumf %10, %11 : vector<8x128xf32>
    %c0_9 = arith.constant 0 : index
    %c0_10 = arith.constant 0 : index
    %c0_11 = arith.constant 0 : index
    %13 = vector.load %arg7[%c0_9, %c0_10, %c0_11] : memref<1x128x128xf32, #tpu.memory_space<vmem>>, vector<1x128x128xf32>
    %14 = vector.shape_cast %13 : vector<1x128x128xf32> to vector<128x128xf32>
    %cst_12 = arith.constant dense<0.000000e+00> : vector<8x128xf32>
    %15 = tpu.matmul %12, %14, %cst_12 {dimension_numbers = #tpu.dot_dimension_numbers<[1], [0], [0], [1], [0, 0, 1, 1], [], []>} : vector<8x128xf32>, vector<128x128xf32>, vector<8x128xf32> -> vector<8x128xf32>
    %c0_13 = arith.constant 0 : index
    %c0_14 = arith.constant 0 : index
    %c0_15 = arith.constant 0 : index
    %16 = vector.load %arg8[%c0_13, %c0_14, %c0_15] : memref<1x1x128xf32, #tpu.memory_space<vmem>>, vector<1x1x128xf32>
    %17 = vector.shape_cast %16 : vector<1x1x128xf32> to vector<1x128xf32>
    %18 = vector.broadcast %17 : vector<1x128xf32> to vector<8x128xf32>
    %19 = arith.addf %15, %18 : vector<8x128xf32>
    %c0_16 = arith.constant 0 : index
    %c0_17 = arith.constant 0 : index
    %20 = vector.load %arg12[%c0_16, %c0_17] : memref<8x128xf32, #tpu.memory_space<vmem>>, vector<8x128xf32>
    tpu.vector_store %arg12[%c0_16, %c0_17], %19 {strides = array<i32>} : memref<8x128xf32, #tpu.memory_space<vmem>>, vector<8x128xf32>,
    %c2_i32 = arith.constant 2 : i32
    %21 = arith.cmpi eq, %arg1, %c2_i32 : i32
    %22 = arith.extui %21 : i1 to i32
    %c0_i32_18 = arith.constant 0 : i32
    %23 = arith.cmpi ne, %22, %c0_i32_18 : i32
    scf.if %23 {
      %c0_19 = arith.constant 0 : index
      %c0_20 = arith.constant 0 : index
      %24 = vector.load %arg12[%c0_19, %c0_20] : memref<8x128xf32, #tpu.memory_space<vmem>>, vector<8x128xf32>
      %c0_21 = arith.constant 0 : index
      %c0_22 = arith.constant 0 : index
      %25 = vector.load %arg9[%c0_21, %c0_22] : memref<128x128xf32, #tpu.memory_space<vmem>>, vector<128x128xf32>
      %cst_23 = arith.constant dense<0.000000e+00> : vector<8x128xf32>
      %26 = tpu.matmul %24, %25, %cst_23 {dimension_numbers = #tpu.dot_dimension_numbers<[1], [0], [0], [1], [0, 0, 1, 1], [], []>} : vector<8x128xf32>, vector<128x128xf32>, vector<8x128xf32> -> vector<8x128xf32>
      %c0_24 = arith.constant 0 : index
      %c0_25 = arith.constant 0 : index
      %27 = vector.load %arg10[%c0_24, %c0_25] : memref<1x128xf32, #tpu.memory_space<vmem>>, vector<1x128xf32>
      %28 = vector.broadcast %27 : vector<1x128xf32> to vector<8x128xf32>
      %29 = arith.addf %26, %28 : vector<8x128xf32>
      %c0_26 = arith.constant 0 : index
      %c0_27 = arith.constant 0 : index
      %30 = vector.load %arg11[%c0_26, %c0_27] : memref<8x128xf32, #tpu.memory_space<vmem>>, vector<8x128xf32>
      tpu.vector_store %arg11[%c0_26, %c0_27], %29 {strides = array<i32>} : memref<8x128xf32, #tpu.memory_space<vmem>>, vector<8x128xf32>,
    } else {
    }
    return
  }
  func.func @transform_0(%arg0: i32, %arg1: i32) -> (i32, i32) {
    %c0_i32 = arith.constant 0 : i32
    %c0_i32_0 = arith.constant 0 : i32
    return %arg0, %c0_i32 : i32, i32
  }
  func.func @transform_1(%arg0: i32, %arg1: i32) -> (i32, i32) {
    %c0_i32 = arith.constant 0 : i32
    %c0_i32_0 = arith.constant 0 : i32
    %c0_i32_1 = arith.constant 0 : i32
    return %c0_i32, %c0_i32_0 : i32, i32
  }
  func.func @transform_2(%arg0: i32, %arg1: i32) -> (i32, i32) {
    %c0_i32 = arith.constant 0 : i32
    %c0_i32_0 = arith.constant 0 : i32
    %c0_i32_1 = arith.constant 0 : i32
    return %c0_i32, %c0_i32_0 : i32, i32
  }
  func.func @transform_3(%arg0: i32, %arg1: i32) -> (i32, i32, i32) {
    %c0_i32 = arith.constant 0 : i32
    %c0_i32_0 = arith.constant 0 : i32
    %c0_i32_1 = arith.constant 0 : i32
    return %arg1, %c0_i32, %c0_i32_0 : i32, i32, i32
  }
  func.func @transform_4(%arg0: i32, %arg1: i32) -> (i32, i32, i32) {
    %c0_i32 = arith.constant 0 : i32
    %c0_i32_0 = arith.constant 0 : i32
    %c0_i32_1 = arith.constant 0 : i32
    return %arg1, %c0_i32, %c0_i32_0 : i32, i32, i32
  }
  func.func @transform_5(%arg0: i32, %arg1: i32) -> (i32, i32, i32) {
    %c0_i32 = arith.constant 0 : i32
    %c0_i32_0 = arith.constant 0 : i32
    %c0_i32_1 = arith.constant 0 : i32
    return %arg1, %c0_i32, %c0_i32_0 : i32, i32, i32
  }
  func.func @transform_6(%arg0: i32, %arg1: i32) -> (i32, i32, i32) {
    %c0_i32 = arith.constant 0 : i32
    %c0_i32_0 = arith.constant 0 : i32
    %c0_i32_1 = arith.constant 0 : i32
    return %arg1, %c0_i32, %c0_i32_0 : i32, i32, i32
  }
  func.func @transform_7(%arg0: i32, %arg1: i32) -> (i32, i32) {
    %c0_i32 = arith.constant 0 : i32
    %c0_i32_0 = arith.constant 0 : i32
    %c0_i32_1 = arith.constant 0 : i32
    return %c0_i32, %c0_i32_0 : i32, i32
  }
  func.func @transform_8(%arg0: i32, %arg1: i32) -> (i32, i32) {
    %c0_i32 = arith.constant 0 : i32
    %c0_i32_0 = arith.constant 0 : i32
    %c0_i32_1 = arith.constant 0 : i32
    return %c0_i32, %c0_i32_0 : i32, i32
  }
  func.func @transform_9(%arg0: i32, %arg1: i32) -> (i32, i32) {
    %c0_i32 = arith.constant 0 : i32
    %c0_i32_0 = arith.constant 0 : i32
    return %arg0, %c0_i32 : i32, i32
  }
}

</mosaic_0001>

<bundles_post_ra>
// kernel: tpu_custom_call.1
= control target key start
LH: loop header
LB: loop body
LE: loop exit
PB: predicated region body
PF: predicated region fallthrough
CT: control target
= control target key end

     0   :  { %s2110_s0 = inlined_call_operand.hbm [shape: f32[8,128], index: 0, kind: input, shape index: {}]   ;;  %s2111_s1 = inlined_call_operand.hbm [shape: f32[128,128], index: 1, kind: input, shape index: {}]   ;;  %s2112_s2 = inlined_call_operand.vmem [shape: f32[1,128], index: 2, kind: input, shape index: {}]   ;;  %s2113_s3 = inlined_call_operand.hbm [shape: f32[3,128,128], index: 3, kind: input, shape index: {}]   ;;  %s2114_s4 = inlined_call_operand.vmem [shape: f32[3,1,128], index: 4, kind: input, shape index: {}]   ;;  %s2115_s5 = inlined_call_operand.hbm [shape: f32[3,128,128], index: 5, kind: input, shape index: {}]   ;;  %s2116_s6 = inlined_call_operand.vmem [shape: f32[3,1,128], index: 6, kind: input, shape index: {}]   ;;  %s2117_s7 = inlined_call_operand.hbm [shape: f32[128,128], index: 7, kind: input, shape index: {}]   ;;  %s2118_s8 = inlined_call_operand.vmem [shape: f32[1,128], index: 8, kind: input, shape index: {}]   ;;  %s2119_s9 = inlined_call_operand.hbm [shape: f32[8,128], index: 9, kind: output, shape index: {}]  }
   0x1   :  { %2137 = sst [smem:[#allocation20_spill]] %s2110_s0 }
   0x2   :  { %2138 = sst [smem:[#allocation21_spill]] %s2111_s1 }
   0x3   :  { %2139 = sst [smem:[#allocation22_spill]] %s2112_s2 }
   0x4   :  { %2140 = sst [smem:[#allocation23_spill]] %s2113_s3 }
   0x5   :  { %2141 = sst [smem:[#allocation24_spill]] %s2114_s4 }
   0x6   :  { %2142 = sst [smem:[#allocation25_spill]] %s2116_s6 }
   0x7   :  { %2143 = sst [smem:[#allocation26_spill]] %s2118_s8 }
   0x8   :  { %2144 = sst [smem:[#allocation27_spill]] %s2119_s9 }
   0x9   :  { %14 = vsyncpa [#allocation4], 0 }
   0xa   :  { %15 = vsyncpa [#allocation7], 0 }
   0xb   :  { %16 = vsyncpa [#allocation5], 0  ;;  %s1740_s30 = smov 0   ;;  %s1742_s10 = smov 0  }
   0xc   :  { %s1744_s11 = smov 0   ;;  %s1746_s12 = smov 0  }
   0xd   :  { %s1748_s13 = smov 0   ;;  %s1750_s14 = smov 0  }
   0xe LB: > { %2145 = sst [smem:[#allocation17_spill]] %s1663_s12  ;;  %s1769_s15 = sadd.s32 4294967295, %s1671_s14   ;;  %s1671_s14 = sphi %s1750_s14, %s22_s14   ;;  %s1667_s13 = sphi %s1748_s13, %s2189_s13   ;;  %s1663_s12 = sphi %s1746_s12, %s2188_s12   ;;  %s1659_s11 = sphi %s1744_s11, %s2187_s11   ;;  %s1655_s10 = sphi %s1742_s10, %s2186_s10   ;;  %s1651_s30 = sphi %s1740_s30, %s2185_s30  }
   0xf   : > { %2146 = sst [smem:[#allocation18_spill]] %s1671_s14  ;;  %p116_p0 = scmp.ne.s32.totalorder %s1659_s11, %s1655_s10 }
  0x10   : > { %p117_p1 = scmp.eq.s32.totalorder %s1671_s14, 0  ;;  %p122_p2 = scmp.ne.s32.totalorder %s1655_s10, %s1651_s30 }
  0x11   : > { %p2120_p3 = scmp.eq.s32.totalorder %s1769_s15, 0  ;;  %p993_p5 = scmp.ge.s32.totalorder %s1671_s14, 1 }
  0x12   : > { %p118_p4 = por %p117_p1, %p116_p0  ;;  %p279_p7 = scmp.lt.s32.totalorder %s1671_s14, 4 }
  0x13   : > { %p1780_p6 = por %p2120_p3, %p122_p2  ;;  %s1673_s19 = smov [#allocation3]  }
  0x14   : > { %p1785_p8 = pnand %p993_p5, %p279_p7  ;;  %s294_s20 = sshll.u32 %s1673_s19, 4  ;;  %s295_s20 = int_to_ptr.vmem [resolvable:$true] %s294_s20 }
  0x15   : > { %s2147_s17 = scalar_select %p1780_p6, 1, 0 }
  0x16   : > { %s2148_s18 = scalar_select %p1785_p8, 1, 0 }
  0x17   : > { %p1346_p9 = pneg %p1785_p8  ;;  %p1366_p10 = scmp.lt.s32.totalorder %s1671_s14, 3 }
  0x18   : > { %s1674_s23 = smov [#allocation6]   ;;  %s2151_s0 = sld [smem:[#allocation20_spill]] }
  0x19   : > { %p1794_p11 = pnand %p1346_p9, %p2120_p3  ;;  %p1798_p12 = pnand %p1366_p10, %p118_p4 }
  0x1a   : > { %s304_s24 = sshll.u32 %s1674_s23, 4  ;;  %s305_s24 = int_to_ptr.vmem [resolvable:$true] %s304_s24 }
  0x1b   : > { %s2149_s21 = scalar_select %p1794_p11, 1, 0 }
  0x1c   : > { %s2150_s22 = scalar_select %p1798_p12, 1, 0 }
  0x1d   : > { %p1810_p0 = pneg %p1794_p11 }
  0x1e   : > { %s1435_s27 = scalar_lea.hbm %s2151_s0, 128 }
  0x1f   : > { %p1436_p13 = scmp.ne.s32.totalorder %s2151_s0, %s1435_s27  ;;  %p1442_p4 = scmp.lt.u32.totalorder %s1435_s27, %s2151_s0 }
  0x20   : > { %s2152_s30 = scalar_select %p1810_p0, 1, 0 }
  0x21   : > { %p1438_p1 = pnand %p1810_p0, %p1436_p13 }
  0x23   : > { %p1439_p2 = pneg %p1438_p1 }
  0x25   : > { %p1444_p5 = pnand %p1442_p4, %p1439_p2 }
  0x27   : > { %1447 = shalt.err (!%p1444_p5)
}
  0x28   : > { %s1448_s23 = scalar_lea.vmem %s295_s20, 128  ;;  %p1456_p3 = scmp.lt.s32.totalorder %s295_s20, %s295_s20 }
  0x29   : > { %p1449_p7 = scmp.ne.s32.totalorder %s295_s20, %s1448_s23  ;;  %p1457_p6 = scmp.lt.s32.totalorder %s1448_s23, %s1448_s23 }
  0x2b   : > { %p1451_p9 = pnand %p1449_p7, %p1810_p0  ;;  %p1458_p8 = por %p1457_p6, %p1456_p3 }
  0x2d   : > { %p1452_p10 = pneg %p1451_p9 }
  0x2f   : > { %p1459_p12 = pnand %p1458_p8, %p1452_p10 }
  0x31   : > { %1462 = shalt.err (!%p1459_p12)
}
  0x32   : > { %1349 = dma.hbm_to_vmem [thread:$0]  (!%p1794_p11), %s2151_s0, 128, %s295_s20, [#allocation4]  }
  0x33   : > { %s2153_s1 = sld [smem:[#allocation21_spill]] }
  0x39   : > { %s1463_s28 = scalar_lea.hbm %s2153_s1, 2048 }
  0x3a   : > { %p1464_p13 = scmp.ne.s32.totalorder %s2153_s1, %s1463_s28  ;;  %p1470_p8 = scmp.lt.u32.totalorder %s1463_s28, %s2153_s1 }
  0x3c   : > { %p1466_p3 = pnand %p1464_p13, %p1810_p0 }
  0x3e   : > { %p1467_p6 = pneg %p1466_p3 }
  0x40   : > { %p1472_p12 = pnand %p1470_p8, %p1467_p6 }
  0x42   : > { %1475 = shalt.err (!%p1472_p12)
}
  0x43   : > { %s1476_s25 = scalar_lea.vmem %s305_s24, 2048  ;;  %p1484_p5 = scmp.lt.s32.totalorder %s305_s24, %s305_s24 }
  0x44   : > { %p1477_p1 = scmp.ne.s32.totalorder %s305_s24, %s1476_s25  ;;  %p1485_p7 = scmp.lt.s32.totalorder %s1476_s25, %s1476_s25 }
  0x46   : > { %p1479_p2 = pnand %p1477_p1, %p1810_p0  ;;  %p1486_p9 = por %p1485_p7, %p1484_p5 }
  0x48   : > { %p1480_p4 = pneg %p1479_p2 }
  0x4a   : > { %p1487_p10 = pnand %p1486_p9, %p1480_p4 }
  0x4c   : > { %1490 = shalt.err (!%p1487_p10)
}
  0x4d   : > { %s2125_s20 = smov 128   ;;  %s2127_s9 = smov 8  }
  0x4e   : > { %1352 = dma.hbm_to_vmem [thread:$0]  (!%p1794_p11), %s2153_s1, 2048, %s305_s24, [#allocation7], %s2125_s20, %s2125_s20, %s2127_s9  }
  0x4f   : > { %s337_s27 = sand.u32 1, %s1671_s14   ;;  %s31_s28 = sadd.s32 1, %s1667_s13 }
  0x50   : > { %p32_p13 = scmp.ge.s32.totalorder %s31_s28, 3  ;;  %s339_s29 = sand.u32 1, %s1659_s11  }
  0x51   : > { %s1850_s19 = sshll.u32 %s339_s29, 7  ;;  %s2129_s23 = sshll.u32 %s1667_s13, 11 }
  0x52   : > { %s2191_s28 = smov (%p32_p13, %s31_s28), 0  ;;  %s2155_s3 = sld [smem:[#allocation23_spill]] }
  0x53   : > { %2154 = sst [smem:[#allocation19_spill]] %s2191_s28  ;;  %s106_s24 = ssub.s32 %s1667_s13, %s2191_s28 }
  0x54   : > { %s341_s26 = scalar_lea.vmem [#allocation8], %s1850_s19  ;;  %p1865_p3 = scmp.eq.s32.totalorder %s106_s24, 0 }
  0x55   : > { %s348_s16 = sshll.u32 %s341_s26, 4  ;;  %s1871_s20 = scalar_lea.sflag [#allocation4], %s337_s27  ;;  %s1869_s16 = int_to_ptr.vmem [resolvable:$true] %s348_s16 }
  0x56   : > { %p2157_p8 = scmp.ne.s32.totalorder %s2150_s22, 0 }
  0x58   : > { %s1860_s8 = scalar_lea.hbm %s2155_s3, %s2129_s23  ;;  %p2136_p12 = pneg %p2157_p8 }
  0x59   : > { %s1491_s9 = scalar_lea.hbm %s1860_s8, 2048  ;;  %s1496_s26 = scalar_lea.hbm %s2155_s3, 6144 }
  0x5a   : > { %p1492_p6 = scmp.ne.s32.totalorder %s1860_s8, %s1491_s9  ;;  %p1497_p4 = scmp.lt.u32.totalorder %s1860_s8, %s2155_s3 }
  0x5b   : > { %p1498_p5 = scmp.lt.u32.totalorder %s1496_s26, %s1491_s9  ;;  %p1500_p9 = scmp.lt.u32.totalorder %s1491_s9, %s1860_s8 }
  0x5c   : > { %p1494_p1 = pnand %p2136_p12, %p1492_p6 }
  0x5d   : > { %p1499_p7 = por %p1498_p5, %p1497_p4 }
  0x5e   : > { %p1495_p2 = pneg %p1494_p1 }
  0x5f   : > { %p1501_p10 = por %p1500_p9, %p1499_p7 }
  0x61   : > { %p1502_p13 = pnand %p1501_p10, %p1495_p2 }
  0x63   : > { %1505 = shalt.err (!%p1502_p13)
}
  0x64   : > { %s1506_s27 = scalar_lea.vmem %s1869_s16, 2048  ;;  %s1677_s0 = smov [#allocation8]  }
  0x65   : > { %p1507_p6 = scmp.ne.s32.totalorder %s1869_s16, %s1506_s27  ;;  %s1511_s25 = sshll.u32 %s1677_s0, 4  ;;  %s1512_s25 = int_to_ptr.vmem [resolvable:$false] %s1511_s25 }
  0x66   : > { %s1513_s23 = scalar_lea.vmem %s1512_s25, 4096  ;;  %p1514_p0 = scmp.lt.s32.totalorder %s1869_s16, %s1512_s25 }
  0x67   : > { %p1509_p1 = pnand %p1507_p6, %p2136_p12  ;;  %p1515_p4 = scmp.lt.s32.totalorder %s1513_s23, %s1506_s27 }
  0x69   : > { %p1510_p11 = pneg %p1509_p1  ;;  %p1516_p5 = por %p1515_p4, %p1514_p0 }
  0x6b   : > { %p1517_p7 = pnand %p1516_p5, %p1510_p11 }
  0x6d   : > { %1520 = shalt.err (!%p1517_p7)
}
  0x6e   : > { %s2158_s9 = smov 8   ;;  %s2159_s26 = smov 128  }
  0x6f   : > { %1359 = dma.hbm_to_vmem [thread:$0]  (!%p2157_p8), %s1860_s8, 2048, %s1869_s16, %s1871_s20, %s2159_s26, %s2159_s26, %s2158_s9  }
  0x70   : > { %s2160_s24 = sadd.s32 1, %s1659_s11  ;;  %s1678_s0 = smov [#allocation10]  }
  0x71   : > { %s1907_s27 = scalar_select %p1865_p3, %s1659_s11, %s2160_s24  }
  0x72   : > { %s320_s25 = sshll.u32 %s1678_s0, 4  ;;  %s2161_s23 = sshll.u32 %s1667_s13, 11  ;;  %s321_s25 = int_to_ptr.vmem [resolvable:$true] %s320_s25 }
  0x73   : > { %s1914_s28 = scalar_lea.hbm %s2115_s5, %s2161_s23  ;;  %s368_s14 = scalar_lea.vmem [#allocation9], %s1850_s19 }
  0x74   : > { %s375_s2 = sshll.u32 %s368_s14, 4  ;;  %s1521_s12 = scalar_lea.hbm %s2117_s7, 2048  ;;  %s1938_s2 = int_to_ptr.vmem [resolvable:$true] %s375_s2 }
  0x75   : > { %p1522_p11 = scmp.ne.s32.totalorder %s2117_s7, %s1521_s12  ;;  %p2162_p0 = scmp.ne.s32.totalorder %s2152_s30, 0 }
  0x76   : > { %p1528_p9 = scmp.lt.u32.totalorder %s1521_s12, %s2117_s7 }
  0x77   : > { %p1524_p3 = pnand %p1522_p11, %p2162_p0 }
  0x79   : > { %p1525_p2 = pneg %p1524_p3 }
  0x7b   : > { %p1530_p10 = pnand %p1528_p9, %p1525_p2 }
  0x7d   : > { %1533 = shalt.err (!%p1530_p10)
}
  0x7e   : > { %s1534_s1 = scalar_lea.vmem %s321_s25, 2048  ;;  %p1542_p4 = scmp.lt.s32.totalorder %s321_s25, %s321_s25 }
  0x7f   : > { %p1535_p13 = scmp.ne.s32.totalorder %s321_s25, %s1534_s1  ;;  %p1543_p5 = scmp.lt.s32.totalorder %s1534_s1, %s1534_s1 }
  0x81   : > { %p1537_p6 = pnand %p1535_p13, %p2162_p0  ;;  %p1544_p7 = por %p1543_p5, %p1542_p4 }
  0x83   : > { %p1538_p1 = pneg %p1537_p6 }
  0x85   : > { %p1545_p12 = pnand %p1544_p7, %p1538_p1 }
  0x87   : > { %1548 = shalt.err (!%p1545_p12)
}
  0x88   : > { %p2163_p11 = scmp.ne.s32.totalorder %s2149_s21, 0  ;;  %s1549_s6 = scalar_lea.hbm %s1914_s28, 2048 }
  0x89   : > { %p1550_p0 = scmp.ne.s32.totalorder %s1914_s28, %s1549_s6  ;;  %p2164_p12 = pneg %p2157_p8 }
  0x8a   : > { %1355 = dma.hbm_to_vmem [thread:$0]  (!%p2163_p11), %s2117_s7, 2048, %s321_s25, [#allocation7], %s2159_s26, %s2159_s26, %s2158_s9  }
  0x8b   : > { %p1552_p3 = pnand %p1550_p0, %p2164_p12  ;;  %s1554_s21 = scalar_lea.hbm %s2115_s5, 6144 }
  0x8c   : > { %p1555_p9 = scmp.lt.u32.totalorder %s1914_s28, %s2115_s5  ;;  %p1556_p10 = scmp.lt.u32.totalorder %s1554_s21, %s1549_s6 }
  0x8d   : > { %p1553_p2 = pneg %p1552_p3  ;;  %p1558_p6 = scmp.lt.u32.totalorder %s1549_s6, %s1914_s28 }
  0x8e   : > { %p1557_p13 = por %p1556_p10, %p1555_p9 }
  0x90   : > { %p1559_p1 = por %p1558_p6, %p1557_p13 }
  0x92   : > { %p1560_p4 = pnand %p1559_p1, %p1553_p2 }
  0x94   : > { %1563 = shalt.err (!%p1560_p4)
}
  0x95   : > { %s1564_s0 = scalar_lea.vmem %s1938_s2, 2048  ;;  %p2165_p7 = pmov %p2164_p12 }
  0x96   : > { %p1565_p5 = scmp.ne.s32.totalorder %s1938_s2, %s1564_s0  ;;  %s1679_s25 = smov [#allocation9]  }
  0x97   : > { %s1569_s23 = sshll.u32 %s1679_s25, 4  ;;  %s1570_s23 = int_to_ptr.vmem [resolvable:$false] %s1569_s23 }
  0x98   : > { %p1567_p11 = pnand %p1565_p5, %p2165_p7  ;;  %s1571_s8 = scalar_lea.vmem %s1570_s23, 4096 }
  0x99   : > { %p1572_p12 = scmp.lt.s32.totalorder %s1938_s2, %s1570_s23  ;;  %p1573_p3 = scmp.lt.s32.totalorder %s1571_s8, %s1564_s0 }
  0x9a   : > { %p1568_p0 = pneg %p1567_p11 }
  0x9b   : > { %p1574_p9 = por %p1573_p3, %p1572_p12 }
  0x9d   : > { %p1575_p10 = pnand %p1574_p9, %p1568_p0 }
  0x9f   : > { %1578 = shalt.err (!%p1575_p10)
}
  0xa0   : > { %1362 = dma.hbm_to_vmem [thread:$0]  (!%p2157_p8), %s1914_s28, 2048, %s1938_s2, %s1871_s20, %s2159_s26, %s2159_s26, %s2158_s9  }
  0xa1   : > { %p2166_p2 = scmp.ne.s32.totalorder %s2148_s18, 0 }
  0xa2   : > { %p2167_p13 = scmp.eq.s32.totalorder (!%p2166_p2), %s1769_s15, 0 }
  0xa3   : > { %393 = sbr.rel (%p2166_p2) target bundleno = 1158 (0x486), region = 56 }
  0xaa   : > { %1630 = dma.done.wait (%p2167_p13), [#allocation4], 128   ;;  %p2168_p6 = pmov %p2167_p13 }
  0xac   : > { %1632 = vsyncadd (%p2168_p6), [#allocation4], 4294967168  ;;  %p2169_p1 = pmov %p2168_p6 }
  0xae   : > { %1634 = dma.done.wait (%p2169_p1), [#allocation7], 2048   ;;  %p2170_p4 = pmov %p2169_p1 }
  0xaf   : > { %s403_s22 = sand.u32 1, %s1769_s15   ;;  %s405_s2 = sand.u32 1, %s1655_s10  }
  0xb0   : > { %1636 = vsyncadd (%p2170_p4), [#allocation7], 4294965248  ;;  %s1007_s20 = sshll.u32 %s405_s2, 7  ;;  %s404_s18 = scalar_lea.sflag [#allocation4], %s403_s22 }
  0xb1   : > { %s1979_s28 = scalar_lea.vmem [#allocation8], %s1007_s20  ;;  %p2171_p8 = scmp.ne.s32.totalorder %s2147_s17, 0 }
  0xb3   : > { %1638 = dma.done.wait (%p2171_p8), %s404_s18, 4096  }
  0xb4   : > { %1640 = vsyncadd (%p2171_p8), %s404_s18, 4294963200  ;;  %s1985_s9 = scalar_lea.vmem [#allocation9], %s1007_s20  ;;  %p2172_p5 = pmov %p2169_p1 }
  0xb5   : > { %p2173_p7 = pmov %p2169_p1 }
  0xb6   : > { %1642 = dma.done.wait (%p2172_p5), [#allocation7], 2048  }
  0xb7   : > { %1644 = vsyncadd (%p2173_p7), [#allocation7], 4294965248  ;;  %s2174_s26 = sld [smem:[#allocation17_spill]]  ;;  %s2175_s1 = sld [smem:[#allocation24_spill]] }
  0xb8   : > { %s2176_s6 = sld [smem:[#allocation25_spill]] }
  0xbd   : > { %p461_p11 = scmp.lt.s32.totalorder %s2174_s26, 2  ;;  %p1010_p0 = scmp.ne.s32.totalorder %s2174_s26, 0 }
  0xbe   : > { %v472_v0 = vld [vmem:[#allocation6] sm:$0xff] (!%p1010_p0)  ;;  %v473_v1 = vld [vmem:[#allocation6 + $0x8] sm:$0xff] (!%p1010_p0)  ;;  %v474_v2 = vld [vmem:[#allocation6 + $0x10] sm:$0xff] (!%p1010_p0)  ;;  %v1680_v3 = vmov (!%p1010_p0), 0.0|0.0   ;;  %vm1681_vm0 = vmmov (!%p1010_p0), 0   ;;  %v1682_v6 = vmov (!%p1010_p0), 0.0  }
  0xbf   : > { %s1993_s16 = scalar_select %p461_p11, %s2174_s26, 2 }
  0xc0   : > { %470 = sbr.rel (%p1010_p0) target bundleno = 440 (0x1b8), region = 80  ;;  %1230 = vmatprep.subr.bf16.mxu0 (!%p1010_p0), %v1680_v3  ;;  %v1231_v4 = vpack.c.bf16 (!%p1010_p0), %v473_v1, %v472_v0  ;;  %v475_v5 = vld [vmem:[#allocation6 + $0x18] sm:$0xff] (!%p1010_p0)  ;;  %1122 = vmatprep.mubr.msk.f32.mxu0 (!%p1010_p0), %vm1681_vm0, %v1682_v6  ;;  %v476_v8 = vld [vmem:[#allocation6 + $0x20] sm:$0xff] (!%p1010_p0)  ;;  %v477_v9 = vld [vmem:[#allocation6 + $0x28] sm:$0xff] (!%p1010_p0)  ;;  %s2177_s30 = sld [smem:[#allocation22_spill]] (!%p1010_p0) }
  0xc1   : > { %s463_s17 = scalar_lea.vmem %s2175_s1, %s1993_s16  ;;  %s466_s12 = scalar_lea.vmem %s2176_s6, %s1993_s16  ;;  %v1234_v7 = vpack.c.bf16 (!%p1010_p0), %v475_v5, %v474_v2  ;;  %v1237_v10 = vpack.c.bf16 (!%p1010_p0), %v477_v9, %v476_v8  ;;  %v478_v11 = vld [vmem:[#allocation6 + $0x30] sm:$0xff] (!%p1010_p0)  ;;  %v479_v12 = vld [vmem:[#allocation6 + $0x38] sm:$0xff] (!%p1010_p0)  ;;  %v480_v14 = vld [vmem:[#allocation6 + $0x40] sm:$0xff] (!%p1010_p0) }
  0xc2   : > { %1232 = vmatpush3.bf16.msra.mxu0 (!%p1010_p0), %v1231_v4  ;;  %v1240_v13 = vpack.c.bf16 (!%p1010_p0), %v479_v12, %v478_v11  ;;  %v481_v15 = vld [vmem:[#allocation6 + $0x48] sm:$0xff] (!%p1010_p0)  ;;  %v482_v17 = vld [vmem:[#allocation6 + $0x50] sm:$0xff] (!%p1010_p0)  ;;  %v483_v18 = vld [vmem:[#allocation6 + $0x58] sm:$0xff] (!%p1010_p0) }
  0xc3   : > { %1233 = vmatprep.subr.bf16.mxu0 (!%p1010_p0), %v1680_v3  ;;  %v1243_v16 = vpack.c.bf16 (!%p1010_p0), %v481_v15, %v480_v14  ;;  %v1246_v19 = vpack.c.bf16 (!%p1010_p0), %v483_v18, %v482_v17  ;;  %v484_v20 = vld [vmem:[#allocation6 + $0x60] sm:$0xff] (!%p1010_p0)  ;;  %v485_v21 = vld [vmem:[#allocation6 + $0x68] sm:$0xff] (!%p1010_p0)  ;;  %v486_v23 = vld [vmem:[#allocation6 + $0x70] sm:$0xff] (!%p1010_p0) }
  0xc4   : > { %v1249_v22 = vpack.c.bf16 (!%p1010_p0), %v485_v21, %v484_v20  ;;  %v487_v24 = vld [vmem:[#allocation6 + $0x78] sm:$0xff] (!%p1010_p0) }
  0xc5   : > { %v1252_v25 = vpack.c.bf16 (!%p1010_p0), %v487_v24, %v486_v23  ;;  %v471_v26 = vld [vmem:[#allocation3] sm:$0xff] (!%p1010_p0) }
  0xc6   : > { %1235 = vmatpush3.bf16.msra.mxu0 (!%p1010_p0), %v1234_v7  ;;  %v1011_v27 = vld [vmem:[%s2177_s30] ss:$0 sm:$0xff] (!%p1010_p0) }
  0xc7   : > { %1236 = vmatprep.subr.bf16.mxu0 %v1680_v3 }
  0xca   : > { %1238 = vmatpush3.bf16.msra.mxu0 %v1237_v10 }
  0xcb   : > { %1239 = vmatprep.subr.bf16.mxu0 %v1680_v3 }
  0xce   : > { %1241 = vmatpush3.bf16.msra.mxu0 %v1240_v13 }
  0xcf   : > { %1242 = vmatprep.subr.bf16.mxu0 %v1680_v3 }
  0xd2   : > { %1244 = vmatpush3.bf16.msra.mxu0 %v1243_v16 }
  0xd3   : > { %1245 = vmatprep.subr.bf16.mxu0 %v1680_v3 }
  0xd6   : > { %1247 = vmatpush3.bf16.msra.mxu0 %v1246_v19 }
  0xd7   : > { %1248 = vmatprep.subr.bf16.mxu0 %v1680_v3 }
  0xda   : > { %1250 = vmatpush3.bf16.msra.mxu0 %v1249_v22 }
  0xdb   : > { %1251 = vmatprep.subr.bf16.mxu0 %v1680_v3 }
  0xde   : > { %1253 = vmatpush3.bf16.msra.mxu0 %v1252_v25 }
  0xe1   : > { %1123 = vmatmul.mubr.f32.vlgmr.msra.gmra.mrb[0].mxu0 %v471_v26 }
 0x1b4   : > { %v561_v28 = vpop.f32.mrb[0].mxu0 }
 0x1b5   : > { %v562_v29 = vadd.f32 %v1011_v27, %v561_v28  ;;  %v1124_v30 = vpop.f32.mrb[1].mxu0 }
 0x1b7   : > { %565 = vst [vmem:[#allocation2] sm:$0xff] %v562_v29 }
 0x1b8 PF: > { %v567_v31 = vld [vmem:[%s1979_s28] sm:$0xff]  ;;  %v568_v32 = vld [vmem:[%s1979_s28 + $0x8] sm:$0xff]  ;;  %v569_v33 = vld [vmem:[%s1979_s28 + $0x10] sm:$0xff]  ;;  %v1683_v34 = vmov 0.0|0.0   ;;  %vm1684_vm1 = vmmov 0   ;;  %v1685_v37 = vmov 0.0  }
 0x1b9   : > { %1254 = vmatprep.subr.bf16.mxu0 %v1683_v34  ;;  %v1255_v35 = vpack.c.bf16 %v568_v32, %v567_v31  ;;  %v570_v36 = vld [vmem:[%s1979_s28 + $0x18] sm:$0xff]  ;;  %1157 = vmatprep.mubr.msk.f32.mxu0 %vm1684_vm1, %v1685_v37  ;;  %v571_v39 = vld [vmem:[%s1979_s28 + $0x20] sm:$0xff]  ;;  %v572_v40 = vld [vmem:[%s1979_s28 + $0x28] sm:$0xff]  ;;  %s2180_s2 = sld [smem:[#allocation17_spill]] }
 0x1ba   : > { %1278 = vmatprep.subr.bf16.mxu1 %v1683_v34  ;;  %1192 = vmatprep.mubr.msk.f32.mxu1 %vm1684_vm1, %v1685_v37  ;;  %v1258_v38 = vpack.c.bf16 %v570_v36, %v569_v33  ;;  %v661_v41 = vld [vmem:[%s1985_s9] sm:$0xff]  ;;  %v662_v42 = vld [vmem:[%s1985_s9 + $0x8] sm:$0xff]  ;;  %v663_v43 = vld [vmem:[%s1985_s9 + $0x10] sm:$0xff]  ;;  %v1261_v45 = vpack.c.bf16 %v572_v40, %v571_v39 }
 0x1bb   : > { %1256 = vmatpush3.bf16.msra.mxu0 %v1255_v35  ;;  %v664_v44 = vld [vmem:[%s1985_s9 + $0x18] sm:$0xff]  ;;  %v1279_v46 = vpack.c.bf16 %v662_v42, %v661_v41  ;;  %v573_v47 = vld [vmem:[%s1979_s28 + $0x30] sm:$0xff]  ;;  %v665_v50 = vld [vmem:[%s1985_s9 + $0x20] sm:$0xff] }
 0x1bc   : > { %1257 = vmatprep.subr.bf16.mxu0 %v1683_v34  ;;  %v574_v48 = vld [vmem:[%s1979_s28 + $0x38] sm:$0xff]  ;;  %v1282_v49 = vpack.c.bf16 %v664_v44, %v663_v43  ;;  %v666_v51 = vld [vmem:[%s1985_s9 + $0x28] sm:$0xff]  ;;  %v575_v53 = vld [vmem:[%s1979_s28 + $0x40] sm:$0xff] }
 0x1bd   : > { %1280 = vmatpush3.bf16.msra.mxu1 %v1279_v46  ;;  %v1264_v52 = vpack.c.bf16 %v574_v48, %v573_v47  ;;  %v576_v54 = vld [vmem:[%s1979_s28 + $0x48] sm:$0xff]  ;;  %v1285_v55 = vpack.c.bf16 %v666_v51, %v665_v50  ;;  %v667_v56 = vld [vmem:[%s1985_s9 + $0x30] sm:$0xff]  ;;  %v668_v57 = vld [vmem:[%s1985_s9 + $0x38] sm:$0xff] }
 0x1be   : > { %1281 = vmatprep.subr.bf16.mxu1 %v1683_v34  ;;  %v1267_v58 = vpack.c.bf16 %v576_v54, %v575_v53  ;;  %v577_v59 = vld [vmem:[%s1979_s28 + $0x50] sm:$0xff]  ;;  %v578_v60 = vld [vmem:[%s1979_s28 + $0x58] sm:$0xff]  ;;  %v1288_v61 = vpack.c.bf16 %v668_v57, %v667_v56  ;;  %v669_v62 = vld [vmem:[%s1985_s9 + $0x40] sm:$0xff] }
 0x1bf   : > { %1259 = vmatpush3.bf16.msra.mxu0 %v1258_v38  ;;  %v670_v63 = vld [vmem:[%s1985_s9 + $0x48] sm:$0xff]  ;;  %v1270_v0 = vpack.c.bf16 %v578_v60, %v577_v59  ;;  %v579_v1 = vld [vmem:[%s1979_s28 + $0x60] sm:$0xff]  ;;  %v671_v4 = vld [vmem:[%s1985_s9 + $0x50] sm:$0xff]  ;;  %p1014_p12 = scmp.ne.s32.totalorder %s2180_s2, 2 }
 0x1c0   : > { %1260 = vmatprep.subr.bf16.mxu0 %v1683_v34  ;;  %v580_v2 = vld [vmem:[%s1979_s28 + $0x68] sm:$0xff]  ;;  %v1291_v3 = vpack.c.bf16 %v670_v63, %v669_v62  ;;  %v672_v5 = vld [vmem:[%s1985_s9 + $0x58] sm:$0xff]  ;;  %v581_v7 = vld [vmem:[%s1979_s28 + $0x70] sm:$0xff]  ;;  %v1686_v30 = vmov (!%p1014_p12), 0.0|0.0   ;;  %vm1687_vm2 = vmmov (!%p1014_p12), 0   ;;  %v1688_v33 = vmov (!%p1014_p12), 0.0  }
 0x1c1   : > { %1283 = vmatpush3.bf16.msra.mxu1 %v1282_v49  ;;  %v1273_v6 = vpack.c.bf16 %v580_v2, %v579_v1  ;;  %v582_v8 = vld [vmem:[%s1979_s28 + $0x78] sm:$0xff]  ;;  %v1294_v9 = vpack.c.bf16 %v672_v5, %v671_v4  ;;  %v673_v10 = vld [vmem:[%s1985_s9 + $0x60] sm:$0xff]  ;;  %v674_v11 = vld [vmem:[%s1985_s9 + $0x68] sm:$0xff]  ;;  %s2181_s28 = sld [smem:[#allocation26_spill]] (!%p1014_p12) }
 0x1c2   : > { %1284 = vmatprep.subr.bf16.mxu1 %v1683_v34  ;;  %v1276_v12 = vpack.c.bf16 %v582_v8, %v581_v7  ;;  %v1297_v13 = vpack.c.bf16 %v674_v11, %v673_v10  ;;  %v566_v14 = vld [vmem:[#allocation2] sm:$0xff]  ;;  %v676_v16 = vld [vmem:[%s1985_s9 + $0x78] sm:$0xff]  ;;  %v760_v27 = vld [vmem:[#allocation10] sm:$0xff] (!%p1014_p12) }
 0x1c3   : > { %1262 = vmatpush3.bf16.msra.mxu0 %v1261_v45  ;;  %v675_v15 = vld [vmem:[%s1985_s9 + $0x70] sm:$0xff]  ;;  %v761_v28 = vld [vmem:[#allocation10 + $0x8] sm:$0xff] (!%p1014_p12)  ;;  %v763_v32 = vld [vmem:[#allocation10 + $0x18] sm:$0xff] (!%p1014_p12) }
 0x1c4   : > { %1263 = vmatprep.subr.bf16.mxu0 %v1683_v34  ;;  %v1300_v17 = vpack.c.bf16 %v676_v16, %v675_v15  ;;  %v1012_v18 = vld [vmem:[%s463_s17] ss:$0 sm:$0xff]  ;;  %v1303_v31 = vpack.c.bf16 (!%p1014_p12), %v761_v28, %v760_v27  ;;  %v764_v35 = vld [vmem:[#allocation10 + $0x20] sm:$0xff] (!%p1014_p12)  ;;  %v765_v36 = vld [vmem:[#allocation10 + $0x28] sm:$0xff] (!%p1014_p12) }
 0x1c5   : > { %1286 = vmatpush3.bf16.msra.mxu1 %v1285_v55  ;;  %v1013_v23 = vld [vmem:[%s466_s12] ss:$0 sm:$0xff]  ;;  %v1309_v37 = vpack.c.bf16 (!%p1014_p12), %v765_v36, %v764_v35  ;;  %v767_v39 = vld [vmem:[#allocation10 + $0x38] sm:$0xff] (!%p1014_p12)  ;;  %v768_v41 = vld [vmem:[#allocation10 + $0x40] sm:$0xff] (!%p1014_p12) }
 0x1c6   : > { %1287 = vmatprep.subr.bf16.mxu1 %v1683_v34  ;;  %v762_v29 = vld [vmem:[#allocation10 + $0x10] sm:$0xff] (!%p1014_p12)  ;;  %v769_v42 = vld [vmem:[#allocation10 + $0x48] sm:$0xff] (!%p1014_p12)  ;;  %v771_v45 = vld [vmem:[#allocation10 + $0x58] sm:$0xff] (!%p1014_p12) }
 0x1c7   : > { %1265 = vmatpush3.bf16.msra.mxu0 %v1264_v52  ;;  %v766_v38 = vld [vmem:[#allocation10 + $0x30] sm:$0xff] (!%p1014_p12)  ;;  %v1315_v43 = vpack.c.bf16 (!%p1014_p12), %v769_v42, %v768_v41  ;;  %v772_v47 = vld [vmem:[#allocation10 + $0x60] sm:$0xff] (!%p1014_p12)  ;;  %v773_v48 = vld [vmem:[#allocation10 + $0x68] sm:$0xff] (!%p1014_p12) }
 0x1c8   : > { %1266 = vmatprep.subr.bf16.mxu0 %v1683_v34  ;;  %v1312_v40 = vpack.c.bf16 (!%p1014_p12), %v767_v39, %v766_v38  ;;  %v770_v44 = vld [vmem:[#allocation10 + $0x50] sm:$0xff] (!%p1014_p12)  ;;  %v1321_v49 = vpack.c.bf16 (!%p1014_p12), %v773_v48, %v772_v47  ;;  %v775_v51 = vld [vmem:[#allocation10 + $0x78] sm:$0xff] (!%p1014_p12) }
 0x1c9   : > { %1289 = vmatpush3.bf16.msra.mxu1 %v1288_v61  ;;  %v1318_v46 = vpack.c.bf16 (!%p1014_p12), %v771_v45, %v770_v44  ;;  %v774_v50 = vld [vmem:[#allocation10 + $0x70] sm:$0xff] (!%p1014_p12) }
 0x1ca   : > { %1290 = vmatprep.subr.bf16.mxu1 %v1683_v34  ;;  %v1324_v52 = vpack.c.bf16 (!%p1014_p12), %v775_v51, %v774_v50  ;;  %v1015_v54 = vld [vmem:[%s2181_s28] ss:$0 sm:$0xff] (!%p1014_p12) }
 0x1cb   : > { %1268 = vmatpush3.bf16.msra.mxu0 %v1267_v58 }
 0x1cc   : > { %1269 = vmatprep.subr.bf16.mxu0 %v1683_v34 }
 0x1cd   : > { %1292 = vmatpush3.bf16.msra.mxu1 %v1291_v3 }
 0x1ce   : > { %1293 = vmatprep.subr.bf16.mxu1 %v1683_v34 }
 0x1cf   : > { %1271 = vmatpush3.bf16.msra.mxu0 %v1270_v0 }
 0x1d0   : > { %1272 = vmatprep.subr.bf16.mxu0 %v1683_v34 }
 0x1d1   : > { %1295 = vmatpush3.bf16.msra.mxu1 %v1294_v9 }
 0x1d2   : > { %1296 = vmatprep.subr.bf16.mxu1 %v1683_v34 }
 0x1d3   : > { %1274 = vmatpush3.bf16.msra.mxu0 %v1273_v6 }
 0x1d4   : > { %1275 = vmatprep.subr.bf16.mxu0 %v1683_v34 }
 0x1d5   : > { %1298 = vmatpush3.bf16.msra.mxu1 %v1297_v13 }
 0x1d6   : > { %1299 = vmatprep.subr.bf16.mxu1 %v1683_v34  ;;  %v1306_v34 = vpack.c.bf16 (!%p1014_p12), %v763_v32, %v762_v29 }
 0x1d7   : > { %1277 = vmatpush3.bf16.msra.mxu0 %v1276_v12 }
 0x1d8   : > { %1302 = vmatprep.subr.bf16.mxu0 (!%p1014_p12), %v1686_v30 }
 0x1d9   : > { %1301 = vmatpush3.bf16.msra.mxu1 %v1300_v17 }
 0x1da   : > { %1158 = vmatmul.mubr.f32.vlgmr.msra.gmra.mrb[0].mxu0 %v566_v14 }
 0x1db   : > { %1227 = vmatprep.mubr.msk.f32.mxu0 (!%p1014_p12), %vm1687_vm2, %v1688_v33  ;;  %1304 = vmatpush3.bf16.msra.mxu0 (!%p1014_p12), %v1303_v31 }
 0x1dc   : > { %1305 = vmatprep.subr.bf16.mxu0 (!%p1014_p12), %v1686_v30 }
 0x1df   : > { %1307 = vmatpush3.bf16.msra.mxu0 (!%p1014_p12), %v1306_v34 }
 0x1e0   : > { %1308 = vmatprep.subr.bf16.mxu0 (!%p1014_p12), %v1686_v30 }
 0x1e3   : > { %1310 = vmatpush3.bf16.msra.mxu0 (!%p1014_p12), %v1309_v37 }
 0x1e4   : > { %1311 = vmatprep.subr.bf16.mxu0 (!%p1014_p12), %v1686_v30 }
 0x1e7   : > { %1313 = vmatpush3.bf16.msra.mxu0 (!%p1014_p12), %v1312_v40 }
 0x1e8   : > { %1314 = vmatprep.subr.bf16.mxu0 (!%p1014_p12), %v1686_v30 }
 0x1eb   : > { %1316 = vmatpush3.bf16.msra.mxu0 (!%p1014_p12), %v1315_v43 }
 0x1ec   : > { %1317 = vmatprep.subr.bf16.mxu0 (!%p1014_p12), %v1686_v30 }
 0x1ef   : > { %1319 = vmatpush3.bf16.msra.mxu0 (!%p1014_p12), %v1318_v46 }
 0x1f0   : > { %1320 = vmatprep.subr.bf16.mxu0 (!%p1014_p12), %v1686_v30 }
 0x1f3   : > { %1322 = vmatpush3.bf16.msra.mxu0 (!%p1014_p12), %v1321_v49 }
 0x1f4   : > { %1323 = vmatprep.subr.bf16.mxu0 (!%p1014_p12), %v1686_v30 }
 0x1f7   : > { %1325 = vmatpush3.bf16.msra.mxu0 (!%p1014_p12), %v1324_v52 }
 0x2ad   : > { %v656_v19 = vpop.f32.mrb[0].mxu0 }
 0x2ae   : > { %v657_v20 = vadd.f32 %v1012_v18, %v656_v19  ;;  %v1159_v21 = vpop.f32.mrb[1].mxu0 }
 0x2b0   : > { %v660_v22 = vmax.f32 %v657_v20, 0.0 }
 0x2b2   : > { %1193 = vmatmul.mubr.f32.vlgmr.msra.gmra.mrb[0].mxu1 %v660_v22 }
 0x382   : > { %758 = sbr.rel (%p1014_p12) target bundleno = 1127 (0x467), region = 84 }
 0x385   : > { %v750_v24 = vpop.f32.mrb[0].mxu1 }
 0x386   : > { %v751_v25 = vadd.f32 %v1013_v23, %v750_v24  ;;  %v1194_v26 = vpop.f32.mrb[1].mxu1 }
 0x388   : > { %754 = vst [vmem:[#allocation2] sm:$0xff] %v751_v25 }
 0x38f   : > { %v759_v53 = vld [vmem:[#allocation2] sm:$0xff] }
 0x390   : > { %1228 = vmatmul.mubr.f32.vlgmr.msra.gmra.mrb[0].mxu0 %v759_v53 }
 0x463   : > { %v849_v55 = vpop.f32.mrb[0].mxu0 }
 0x464   : > { %v850_v56 = vadd.f32 %v1015_v54, %v849_v55  ;;  %v1229_v57 = vpop.f32.mrb[1].mxu0 }
 0x466   : > { %853 = vst [vmem:[#allocation11] sm:$0xff] %v850_v56 }
 0x467 PF: > { %p1370_p3 = scmp.eq.s32.totalorder %s1769_s15, 2  ;;  %s1689_s9 = smov [#allocation11]  }
 0x468   : > { %s863_s26 = sshll.u32 %s1689_s9, 4  ;;  %s864_s26 = int_to_ptr.vmem [resolvable:$true] %s863_s26 }
 0x469   : > { %s1579_s16 = scalar_lea.vmem %s864_s26, 128  ;;  %p1586_p13 = scmp.lt.s32.totalorder %s864_s26, %s864_s26 }
 0x46a   : > { %p1580_p9 = scmp.ne.s32.totalorder %s864_s26, %s1579_s16  ;;  %p1587_p6 = scmp.lt.s32.totalorder %s1579_s16, %s1579_s16 }
 0x46c   : > { %p1581_p10 = pnand %p1580_p9, %p1370_p3  ;;  %p1588_p1 = por %p1587_p6, %p1586_p13 }
 0x46e   : > { %p1582_p2 = pneg %p1581_p10 }
 0x470   : > { %p1589_p4 = pnand %p1588_p1, %p1582_p2 }
 0x472   : > { %1592 = shalt.err (!%p1589_p4)
}
 0x473   : > { %s2182_s1 = sld [smem:[#allocation27_spill]] }
 0x479   : > { %s1593_s17 = scalar_lea.hbm %s2182_s1, 128 }
 0x47a   : > { %p1594_p8 = scmp.ne.s32.totalorder %s2182_s1, %s1593_s17  ;;  %p1599_p11 = scmp.lt.u32.totalorder %s1593_s17, %s2182_s1 }
 0x47c   : > { %p1595_p5 = pnand %p1594_p8, %p1370_p3 }
 0x47e   : > { %p1596_p7 = pneg %p1595_p5 }
 0x480   : > { %p1601_p0 = pnand %p1599_p11, %p1596_p7 }
 0x482   : > { %1604 = shalt.err (!%p1601_p0)
}
 0x483   : > { %1343 = dma.vmem_to_hbm [thread:$0]  (%p1370_p3), %s864_s26, 128, %s2182_s1, [#allocation5]  }
 0x484   : > { %1646 = dma.done.wait (%p1370_p3), [#allocation5], 128  }
 0x485   : > { %1648 = vsyncadd (%p1370_p3), [#allocation5], 4294967168 }
 0x486 PF: > { %s2183_s30 = sld [smem:[#allocation18_spill]]  ;;  %s2184_s19 = sld [smem:[#allocation19_spill]] }
 0x487   : > { %s2188_s12 = smov %s1667_s13 }
 0x48c   : > { %s22_s14 = sadd.s32 1, %s2183_s30   ;;  %s2185_s30 = smov %s1655_s10 }
 0x48d   : > { %p19_p12 = scmp.ge.s32.totalorder %s22_s14, 5   ;;  %s2186_s10 = smov %s1659_s11 }
 0x48e   : > { %s2187_s11 = smov %s1907_s27  ;;  %s2189_s13 = smov %s2184_s19 }
 0x48f   :  { %21 = sbr.rel (!%p19_p12) target bundleno = 14 (0xe), region = 131 }
 0x496   :  { %876 = vsyncpa [#allocation4], 1 }
 0x497   :  { %878 = vsyncpa [#allocation4 + $0x1], 1 }
 0x498   :  { %879 = vsyncpa [#allocation7], 1 }
 0x499   :  { %880 = vsyncpa [#allocation5], 1 }
 0x49a   :  { %882 = vsyncpa [#allocation5 + $0x1], 1 }

</bundles_post_ra>
